<compile_context>
chip_gen: v7x
topology: tpu7x:2x2x1
jax: 0.10.0
libtpu: 0.0.40
codegen_flags: <defaults>
</compile_context>

<pallas_src>
import jax
import jax.numpy as jnp
from jax.experimental import pallas as pl
from jax.experimental.pallas import tpu as pltpu

INPUT_DIM = 2      # gym MountainCar-v0 observation_space.shape[0]
HIDDEN = 32
OUTPUT_DIM = 3     # gym MountainCar-v0 action_space.n

PALLAS_MIN_BATCH = 64   # below this, a fused XLA path beats Pallas launch cost


def mlp_kernel(x_ref, w1_ref, b1_ref, w2_ref, b2_ref, w3_ref, b3_ref,
               q_ref, a_ref, qa_ref):
    """Batch on lanes: x_ref is (INPUT_DIM, TB); q_ref is (OUTPUT_DIM, TB)."""
    x = x_ref[...]                                           # (2, TB) f32

    # ---- Layer 1 (K=2): two VPU broadcast-FMAs instead of an MXU push. ----
    # h1 = W1 @ x + b1, with W1 in PyTorch-native (out, in) = (32, 2).
    h1 = (w1_ref[:, 0:1] * x[0:1, :]
          + w1_ref[:, 1:2] * x[1:2, :]
          + b1_ref[...])                                     # (32, TB)
    h1 = jnp.maximum(h1, 0.0)                                # ReLU

    # ---- Layer 2: 32x32 matmul on the MXU. ----
    h2 = jnp.dot(w2_ref[...], h1,
                 preferred_element_type=jnp.float32) + b2_ref[...]
    h2 = jnp.maximum(h2, 0.0)                                # (32, TB)

    # ---- Layer 3: (3, 32) @ (32, TB) on the MXU. ----
    q = jnp.dot(w3_ref[...], h2,
                preferred_element_type=jnp.float32) + b3_ref[...]
    q_ref[...] = q.astype(q_ref.dtype)                       # lane-dense store

    # ---- Fused greedy action + Q[action] gather (VPU, first-max tie-break). --
    q0, q1, q2 = q[0:1, :], q[1:2, :], q[2:3, :]
    idx0 = jnp.full(q0.shape, 0, dtype=jnp.int32)
    idx1 = jnp.full(q0.shape, 1, dtype=jnp.int32)
    idx2 = jnp.full(q0.shape, 2, dtype=jnp.int32)
    a01 = jnp.where(q0 >= q1, idx0, idx1)
    v01 = jnp.maximum(q0, q1)
    a_ref[...] = jnp.where(v01 >= q2, a01, idx2)             # (1, TB) int32
    qa_ref[...] = jnp.maximum(v01, q2)                       # (1, TB) f32 = Q[action]


def _batch_tile(batch):
    """Lane tile: multiple of 128 (hard layout minimum), capped at 8192.

    Per-tile VMEM is ~(2+3+1+1)*tb*4 B  (~230 KB at tb=8192, ~0.5 MB
    double-buffered) — tiny even against v7x's 64 MiB VMEM, so fat tiles are
    safe and minimize the number of per-step fixed overheads."""
    return int(min(8192, 128 * pl.cdiv(batch, 128)))


def _pallas_forward(x, params, multicore=False):
    """x: (B, INPUT_DIM) f32.
    Returns (q_t (OUTPUT_DIM, B) f32, actions (B,) int32, q_taken (B,) f32)."""
    B = x.shape[0]
    tb = _batch_tile(B)
    b_pad = tb * pl.cdiv(B, tb)
    num_steps = b_pad // tb

    # Layout plumbing: batch -> lanes, pad to a full lane tile (tiny: 8 B/sample).
    x_t = x.astype(jnp.float32).T                            # (INPUT_DIM, B)
    if b_pad != B:
        x_t = jnp.pad(x_t, ((0, 0), (0, b_pad - B)))

    w1, b1 = params["w1"], params["b1"]
    w2, b2 = params["w2"], params["b2"]
    w3, b3 = params["w3"], params["b3"]

    def const(shape):  # VMEM-resident weight/bias block (same block every step)
        return pl.BlockSpec(shape, lambda i: (0, 0))

    # "parallel" vs "arbitrary" is a measured codegen no-op; only CORE_PARALLEL
    # actually splits work across v7x's two TensorCores.  Opt-in only (and only
    # when there are >= 2 grid steps) so v5e/v6e single-TC chips stay safe.
    if multicore and num_steps >= 2:
        semantics = (pltpu.CORE_PARALLEL,)
    else:
        semantics = ("arbitrary",)

    q_pad, a_pad, qa_pad = pl.pallas_call(
        mlp_kernel,
        out_shape=(jax.ShapeDtypeStruct((OUTPUT_DIM, b_pad), jnp.float32),
                   jax.ShapeDtypeStruct((1, b_pad), jnp.int32),
                   jax.ShapeDtypeStruct((1, b_pad), jnp.float32)),
        grid=(num_steps,),
        in_specs=[
            pl.BlockSpec((INPUT_DIM, tb), lambda i: (0, i)),  # x tile (lane-dense)
            const((HIDDEN, INPUT_DIM)),                       # w1 (32, 2)
            const((HIDDEN, 1)),                               # b1 (32, 1)
            const((HIDDEN, HIDDEN)),                          # w2 (32, 32)
            const((HIDDEN, 1)),                               # b2 (32, 1)
            const((OUTPUT_DIM, HIDDEN)),                      # w3 (3, 32)
            const((OUTPUT_DIM, 1)),                           # b3 (3, 1)
        ],
        out_specs=(
            pl.BlockSpec((OUTPUT_DIM, tb), lambda i: (0, i)),
            pl.BlockSpec((1, tb), lambda i: (0, i)),
            pl.BlockSpec((1, tb), lambda i: (0, i)),
        ),
        compiler_params=pltpu.CompilerParams(dimension_semantics=semantics),
    )(x_t, w1, b1, w2, b2, w3, b3)

    # No output transpose: Q stays lane-dense (OUTPUT_DIM, B); downstream
    # consumers (action, Q[action]) are already computed in-kernel.
    return q_pad[:, :B], a_pad[0, :B], qa_pad[0, :B]


def _xla_forward(x, params):
    """Tiny-batch fallback (DQN act() with a handful of envs): plain fused XLA."""
    x = x.astype(jnp.float32)
    h1 = jnp.maximum(x @ params["w1"].T + params["b1"].T, 0.0)
    h2 = jnp.maximum(h1 @ params["w2"].T + params["b2"].T, 0.0)
    q = h2 @ params["w3"].T + params["b3"].T                 # (B, OUTPUT_DIM)
    actions = jnp.argmax(q, axis=1).astype(jnp.int32)        # first-max tie-break
    q_taken = jnp.max(q, axis=1)
    return q.T, actions, q_taken


def dqn_forward(x, params, force_pallas=False, multicore=False):
    """Forward pass of the DQN Model (greedy path of Model.action()).

    x: (B, INPUT_DIM) f32.
    Returns:
      q_t     : (OUTPUT_DIM, B) f32  Q-values, lane-dense layout
      actions : (B,) int32           greedy argmax action
      q_taken : (B,) f32             Q[action] (== max Q for greedy)
    """
    B = x.shape[0]
    if B < PALLAS_MIN_BATCH and not force_pallas:
        return _xla_forward(x, params)
    return _pallas_forward(x, params, multicore=multicore)


def init_params(key):
    """Mirror the PyTorch module init:
       xavier_normal_ for weights (kept in native (out, in) layout),
       PyTorch-default uniform(-1/sqrt(fan_in), 1/sqrt(fan_in)) for biases,
       stored as (out, 1) columns so they broadcast across the lane/batch axis."""
    ks = jax.random.split(key, 6)

    def xavier_normal(k, fan_out, fan_in):
        std = (2.0 / (fan_in + fan_out)) ** 0.5
        return std * jax.random.normal(k, (fan_out, fan_in), dtype=jnp.float32)

    def bias_uniform(k, fan_in, fan_out):
        bound = 1.0 / (fan_in ** 0.5)
        return jax.random.uniform(k, (fan_out, 1), dtype=jnp.float32,
                                  minval=-bound, maxval=bound)

    return {
        "w1": xavier_normal(ks[0], HIDDEN, INPUT_DIM),
        "b1": bias_uniform(ks[1], INPUT_DIM, HIDDEN),
        "w2": xavier_normal(ks[2], HIDDEN, HIDDEN),
        "b2": bias_uniform(ks[3], HIDDEN, HIDDEN),
        "w3": xavier_normal(ks[4], OUTPUT_DIM, HIDDEN),
        "b3": bias_uniform(ks[5], HIDDEN, OUTPUT_DIM),
    }


def reference_forward(x, p):
    h1 = jnp.maximum(x @ p["w1"].T + p["b1"].T, 0.0)
    h2 = jnp.maximum(h1 @ p["w2"].T + p["b2"].T, 0.0)
    return h2 @ p["w3"].T + p["b3"].T


def _check(x, params, q_t, actions, q_taken, tag):
    B = x.shape[0]
    q_ref = reference_forward(x, params)                     # (B, OUTPUT_DIM)
    assert q_t.shape == (OUTPUT_DIM, B), (tag, q_t.shape)
    assert actions.shape == (B,), (tag, actions.shape)
    assert q_taken.shape == (B,), (tag, q_taken.shape)
    assert jnp.allclose(q_t.T, q_ref, atol=1e-5, rtol=1e-5), f"{tag}: Q mismatch"
    # Robust action check: the Q-value at the chosen action must equal the
    # reference max (tolerant of argmax flips on exact near-ties).
    q_at_a = jnp.take_along_axis(q_ref, actions[:, None].astype(jnp.int32),
                                 axis=1)[:, 0]
    q_max = jnp.max(q_ref, axis=1)
    assert jnp.allclose(q_at_a, q_max, atol=1e-5, rtol=1e-5), f"{tag}: action mismatch"
    assert jnp.allclose(q_taken, q_max, atol=1e-5, rtol=1e-5), f"{tag}: Q[action] mismatch"


# TODO(synk): training path (Adam update, smooth_l1_loss, epsilon-greedy random
# exploration) is host-side PyTorch logic and is intentionally not ported.

if __name__ == "__main__":
    key = jax.random.PRNGKey(0)
    k_params, k_x1, k_x2 = jax.random.split(key, 3)
    params = init_params(k_params)

    # 1) Small acting batch, forced through the Pallas kernel (tb = 128).
    B1 = 8
    x1 = jax.random.normal(k_x1, (B1, INPUT_DIM), dtype=jnp.float32)
    out1 = jax.block_until_ready(dqn_forward(x1, params, force_pallas=True))
    _check(x1, params, *out1, tag="pallas_small")

    # Same small batch through the tiny-batch XLA fallback path.
    out1f = jax.block_until_ready(dqn_forward(x1, params))
    _check(x1, params, *out1f, tag="xla_fallback")

    # 2) Training-sized batch with ragged padding (200 -> 256 lanes), Pallas path.
    B2 = 200
    x2 = jax.random.normal(k_x2, (B2, INPUT_DIM), dtype=jnp.float32)
    out2 = jax.block_until_ready(dqn_forward(x2, params))
    _check(x2, params, *out2, tag="pallas_batch")

    print("KERNEL_OK")
</pallas_src>

<mosaic_0001>
module attributes {stable_mosaic.version = 11 : i64} {
  func.func @mlp_kernel(%arg0: i32, %arg1: memref<2x128xf32, #tpu.memory_space<vmem>>, %arg2: memref<32x2xf32, #tpu.memory_space<vmem>>, %arg3: memref<32x1xf32, #tpu.memory_space<vmem>>, %arg4: memref<32x32xf32, #tpu.memory_space<vmem>>, %arg5: memref<32x1xf32, #tpu.memory_space<vmem>>, %arg6: memref<3x32xf32, #tpu.memory_space<vmem>>, %arg7: memref<3x1xf32, #tpu.memory_space<vmem>>, %arg8: memref<3x128xf32, #tpu.memory_space<vmem>>, %arg9: memref<1x128xi32, #tpu.memory_space<vmem>>, %arg10: memref<1x128xf32, #tpu.memory_space<vmem>>) attributes {dimension_semantics = [#tpu.dimension_semantics<arbitrary>], iteration_bounds = array<i64: 1>, scalar_prefetch = 0 : i64, scratch_operands = 0 : i64, tpu.core_type = #tpu.core_type<tc>, window_params = [{transform_indices = @transform_0, window_bounds = array<i64: 2, 128>}, {pipeline_mode = #tpu.pipeline_mode<synchronous>, transform_indices = @transform_1, window_bounds = array<i64: 32, 2>}, {pipeline_mode = #tpu.pipeline_mode<synchronous>, transform_indices = @transform_2, window_bounds = array<i64: 32, 1>}, {pipeline_mode = #tpu.pipeline_mode<synchronous>, transform_indices = @transform_3, window_bounds = array<i64: 32, 32>}, {pipeline_mode = #tpu.pipeline_mode<synchronous>, transform_indices = @transform_4, window_bounds = array<i64: 32, 1>}, {pipeline_mode = #tpu.pipeline_mode<synchronous>, transform_indices = @transform_5, window_bounds = array<i64: 3, 32>}, {pipeline_mode = #tpu.pipeline_mode<synchronous>, transform_indices = @transform_6, window_bounds = array<i64: 3, 1>}, {transform_indices = @transform_7, window_bounds = array<i64: 3, 128>}, {transform_indices = @transform_8, window_bounds = array<i64: 1, 128>}, {transform_indices = @transform_9, window_bounds = array<i64: 1, 128>}]} {
    %c0 = arith.constant 0 : index
    %c0_0 = arith.constant 0 : index
    %0 = vector.load %arg1[%c0, %c0_0] : memref<2x128xf32, #tpu.memory_space<vmem>>, vector<2x128xf32>
    %c0_1 = arith.constant 0 : index
    %c0_2 = arith.constant 0 : index
    %1 = vector.load %arg2[%c0_1, %c0_2] : memref<32x2xf32, #tpu.memory_space<vmem>>, vector<32x1xf32>
    %2 = vector.extract_strided_slice %0 {offsets = [0, 0], sizes = [1, 128], strides = [1, 1]} : vector<2x128xf32> to vector<1x128xf32>
    %3 = vector.broadcast %1 : vector<32x1xf32> to vector<32x128xf32>
    %4 = vector.broadcast %2 : vector<1x128xf32> to vector<32x128xf32>
    %5 = arith.mulf %3, %4 : vector<32x128xf32>
    %c0_3 = arith.constant 0 : index
    %c1 = arith.constant 1 : index
    %6 = vector.load %arg2[%c0_3, %c1] : memref<32x2xf32, #tpu.memory_space<vmem>>, vector<32x1xf32>
    %7 = vector.extract_strided_slice %0 {offsets = [1, 0], sizes = [1, 128], strides = [1, 1]} : vector<2x128xf32> to vector<1x128xf32>
    %8 = vector.broadcast %6 : vector<32x1xf32> to vector<32x128xf32>
    %9 = vector.broadcast %7 : vector<1x128xf32> to vector<32x128xf32>
    %10 = arith.mulf %8, %9 : vector<32x128xf32>
    %11 = arith.addf %5, %10 : vector<32x128xf32>
    %c0_4 = arith.constant 0 : index
    %c0_5 = arith.constant 0 : index
    %12 = vector.load %arg3[%c0_4, %c0_5] : memref<32x1xf32, #tpu.memory_space<vmem>>, vector<32x1xf32>
    %13 = vector.broadcast %12 : vector<32x1xf32> to vector<32x128xf32>
    %14 = arith.addf %11, %13 : vector<32x128xf32>
    %cst = arith.constant 0.000000e+00 : f32
    %15 = vector.broadcast %cst : f32 to vector<32x128xf32>
    %16 = arith.maximumf %14, %15 : vector<32x128xf32>
    %c0_6 = arith.constant 0 : index
    %c0_7 = arith.constant 0 : index
    %17 = vector.load %arg4[%c0_6, %c0_7] : memref<32x32xf32, #tpu.memory_space<vmem>>, vector<32x32xf32>
    %cst_8 = arith.constant dense<0.000000e+00> : vector<32x128xf32>
    %18 = tpu.matmul %17, %16, %cst_8 {dimension_numbers = #tpu.dot_dimension_numbers<[1], [0], [0], [1], [0, 0, 1, 1], [], []>} : vector<32x32xf32>, vector<32x128xf32>, vector<32x128xf32> -> vector<32x128xf32>
    %c0_9 = arith.constant 0 : index
    %c0_10 = arith.constant 0 : index
    %19 = vector.load %arg5[%c0_9, %c0_10] : memref<32x1xf32, #tpu.memory_space<vmem>>, vector<32x1xf32>
    %20 = vector.broadcast %19 : vector<32x1xf32> to vector<32x128xf32>
    %21 = arith.addf %18, %20 : vector<32x128xf32>
    %cst_11 = arith.constant 0.000000e+00 : f32
    %22 = vector.broadcast %cst_11 : f32 to vector<32x128xf32>
    %23 = arith.maximumf %21, %22 : vector<32x128xf32>
    %c0_12 = arith.constant 0 : index
    %c0_13 = arith.constant 0 : index
    %24 = vector.load %arg6[%c0_12, %c0_13] : memref<3x32xf32, #tpu.memory_space<vmem>>, vector<3x32xf32>
    %cst_14 = arith.constant dense<0.000000e+00> : vector<3x128xf32>
    %25 = tpu.matmul %24, %23, %cst_14 {dimension_numbers = #tpu.dot_dimension_numbers<[1], [0], [0], [1], [0, 0, 1, 1], [], []>} : vector<3x32xf32>, vector<32x128xf32>, vector<3x128xf32> -> vector<3x128xf32>
    %c0_15 = arith.constant 0 : index
    %c0_16 = arith.constant 0 : index
    %26 = vector.load %arg7[%c0_15, %c0_16] : memref<3x1xf32, #tpu.memory_space<vmem>>, vector<3x1xf32>
    %27 = vector.broadcast %26 : vector<3x1xf32> to vector<3x128xf32>
    %28 = arith.addf %25, %27 : vector<3x128xf32>
    %c0_17 = arith.constant 0 : index
    %c0_18 = arith.constant 0 : index
    %29 = vector.load %arg8[%c0_17, %c0_18] : memref<3x128xf32, #tpu.memory_space<vmem>>, vector<3x128xf32>
    tpu.vector_store %arg8[%c0_17, %c0_18], %28 {strides = array<i32>} : memref<3x128xf32, #tpu.memory_space<vmem>>, vector<3x128xf32>,
    %30 = vector.extract_strided_slice %28 {offsets = [0, 0], sizes = [1, 128], strides = [1, 1]} : vector<3x128xf32> to vector<1x128xf32>
    %31 = vector.extract_strided_slice %28 {offsets = [1, 0], sizes = [1, 128], strides = [1, 1]} : vector<3x128xf32> to vector<1x128xf32>
    %32 = vector.extract_strided_slice %28 {offsets = [2, 0], sizes = [1, 128], strides = [1, 1]} : vector<3x128xf32> to vector<1x128xf32>
    %c0_i32 = arith.constant 0 : i32
    %33 = vector.broadcast %c0_i32 : i32 to vector<1x128xi32>
    %c1_i32 = arith.constant 1 : i32
    %34 = vector.broadcast %c1_i32 : i32 to vector<1x128xi32>
    %c2_i32 = arith.constant 2 : i32
    %35 = vector.broadcast %c2_i32 : i32 to vector<1x128xi32>
    %36 = arith.cmpf oge, %30, %31 : vector<1x128xf32>
    %37 = arith.select %36, %33, %34 : vector<1x128xi1>, vector<1x128xi32>
    %38 = arith.maximumf %30, %31 : vector<1x128xf32>
    %39 = arith.cmpf oge, %38, %32 : vector<1x128xf32>
    %40 = arith.select %39, %37, %35 : vector<1x128xi1>, vector<1x128xi32>
    %c0_19 = arith.constant 0 : index
    %c0_20 = arith.constant 0 : index
    %41 = vector.load %arg9[%c0_19, %c0_20] : memref<1x128xi32, #tpu.memory_space<vmem>>, vector<1x128xi32>
    tpu.vector_store %arg9[%c0_19, %c0_20], %40 {strides = array<i32>} : memref<1x128xi32, #tpu.memory_space<vmem>>, vector<1x128xi32>,
    %42 = arith.maximumf %38, %32 : vector<1x128xf32>
    %c0_21 = arith.constant 0 : index
    %c0_22 = arith.constant 0 : index
    %43 = vector.load %arg10[%c0_21, %c0_22] : memref<1x128xf32, #tpu.memory_space<vmem>>, vector<1x128xf32>
    tpu.vector_store %arg10[%c0_21, %c0_22], %42 {strides = array<i32>} : memref<1x128xf32, #tpu.memory_space<vmem>>, vector<1x128xf32>,
    return
  }
  func.func @transform_0(%arg0: i32) -> (i32, i32) {
    %c0_i32 = arith.constant 0 : i32
    %c0_i32_0 = arith.constant 0 : i32
    return %c0_i32, %arg0 : i32, i32
  }
  func.func @transform_1(%arg0: i32) -> (i32, i32) {
    %c0_i32 = arith.constant 0 : i32
    %c0_i32_0 = arith.constant 0 : i32
    %c0_i32_1 = arith.constant 0 : i32
    return %c0_i32, %c0_i32_0 : i32, i32
  }
  func.func @transform_2(%arg0: i32) -> (i32, i32) {
    %c0_i32 = arith.constant 0 : i32
    %c0_i32_0 = arith.constant 0 : i32
    %c0_i32_1 = arith.constant 0 : i32
    return %c0_i32, %c0_i32_0 : i32, i32
  }
  func.func @transform_3(%arg0: i32) -> (i32, i32) {
    %c0_i32 = arith.constant 0 : i32
    %c0_i32_0 = arith.constant 0 : i32
    %c0_i32_1 = arith.constant 0 : i32
    return %c0_i32, %c0_i32_0 : i32, i32
  }
  func.func @transform_4(%arg0: i32) -> (i32, i32) {
    %c0_i32 = arith.constant 0 : i32
    %c0_i32_0 = arith.constant 0 : i32
    %c0_i32_1 = arith.constant 0 : i32
    return %c0_i32, %c0_i32_0 : i32, i32
  }
  func.func @transform_5(%arg0: i32) -> (i32, i32) {
    %c0_i32 = arith.constant 0 : i32
    %c0_i32_0 = arith.constant 0 : i32
    %c0_i32_1 = arith.constant 0 : i32
    return %c0_i32, %c0_i32_0 : i32, i32
  }
  func.func @transform_6(%arg0: i32) -> (i32, i32) {
    %c0_i32 = arith.constant 0 : i32
    %c0_i32_0 = arith.constant 0 : i32
    %c0_i32_1 = arith.constant 0 : i32
    return %c0_i32, %c0_i32_0 : i32, i32
  }
  func.func @transform_7(%arg0: i32) -> (i32, i32) {
    %c0_i32 = arith.constant 0 : i32
    %c0_i32_0 = arith.constant 0 : i32
    return %c0_i32, %arg0 : i32, i32
  }
  func.func @transform_8(%arg0: i32) -> (i32, i32) {
    %c0_i32 = arith.constant 0 : i32
    %c0_i32_0 = arith.constant 0 : i32
    return %c0_i32, %arg0 : i32, i32
  }
  func.func @transform_9(%arg0: i32) -> (i32, i32) {
    %c0_i32 = arith.constant 0 : i32
    %c0_i32_0 = arith.constant 0 : i32
    return %c0_i32, %arg0 : i32, i32
  }
}

</mosaic_0001>

<bundles_post_ra>
// kernel: tpu_custom_call.1
= control target key start
LH: loop header
LB: loop body
LE: loop exit
PB: predicated region body
PF: predicated region fallthrough
CT: control target
= control target key end

     0   :  { %15 = vsyncpa [#allocation3], 0  ;;  %v530_v2 = vmov 1   ;;  %s698_s0 = inlined_call_operand.vmem [shape: f32[2,128], index: 0, kind: input, shape index: {}]   ;;  %s699_s1 = inlined_call_operand.vmem [shape: f32[32,2], index: 1, kind: input, shape index: {}]   ;;  %s700_s2 = inlined_call_operand.vmem [shape: f32[32,1], index: 2, kind: input, shape index: {}]   ;;  %s701_s3 = inlined_call_operand.vmem [shape: f32[32,32], index: 3, kind: input, shape index: {}]   ;;  %s702_s4 = inlined_call_operand.vmem [shape: f32[32,1], index: 4, kind: input, shape index: {}]   ;;  %s703_s5 = inlined_call_operand.vmem [shape: f32[3,32], index: 5, kind: input, shape index: {}]   ;;  %s704_s6 = inlined_call_operand.vmem [shape: f32[3,1], index: 6, kind: input, shape index: {}]   ;;  %s705_s7 = inlined_call_operand.hbm [shape: f32[3,128], index: 7, kind: output, shape index: {0}]   ;;  %s706_s8 = inlined_call_operand.hbm [shape: s32[1,128], index: 8, kind: output, shape index: {1}]   ;;  %s707_s9 = inlined_call_operand.hbm [shape: f32[1,128], index: 9, kind: output, shape index: {2}]  }
   0x1   :  { %v34_v0 = vld [vmem:[%s699_s1 + $0x10] sm:$0xff]  ;;  %v32_v1 = vld [vmem:[%s699_s1] sm:$0xff]  ;;  %456 = vset.pattern.permute.xlu0 %v530_v2  ;;  %454 = vset.pattern.permute.xlu1 %v530_v2  ;;  %v33_v3 = vld [vmem:[%s699_s1 + $0x8] sm:$0xff] }
   0x2   :  { %73 = vperm.xlu0 %456, %v34_v0   ;;  %65 = vperm.xlu1 %454, %v32_v1  }
   0x3   :  { %16 = vsyncpa [#allocation5], 0  ;;  %v531_v4 = vmov 0   ;;  %v35_v5 = vld [vmem:[%s699_s1 + $0x18] sm:$0xff]  ;;  %v93_v6 = vld [vmem:[%s700_s2 + $0x8] sm:$0xff]  ;;  %vm152_vm0 = vcmask 261120   ;;  %v56_v16 = vlaneseq }
   0x4   :  { %v92_v7 = vld [vmem:[%s700_s2] sm:$0xff]  ;;  %v94_v9 = vld [vmem:[%s700_s2 + $0x10] sm:$0xff]  ;;  %v95_v11 = vld [vmem:[%s700_s2 + $0x18] sm:$0xff]  ;;  %v532_v60 = vmov 0.0|0.0   ;;  %vm533_vm1 = vmmov 0   ;;  %v534_v61 = vmov 0.0  }
   0x5   :  { %v128_v8 = vld [vmem:[%s702_s4] sm:$0xff]  ;;  %v130_v10 = vld [vmem:[%s702_s4 + $0x10] sm:$0xff]  ;;  %v129_v13 = vld [vmem:[%s702_s4 + $0x8] sm:$0xff]  ;;  %v57_v19 = vshrl.u32 %v56_v16, 7  ;;  %440 = vmatprep.subr.bf16.mxu1 %v532_v60  ;;  %429 = vmatprep.mubr.msk.f32.mxu1 %vm533_vm1, %v534_v61  ;;  %s535_s20 = smov [#allocation2]   ;;  %s536_s22 = smov [#allocation4]  }
   0x6   :  { %457 = vset.pattern.permute.xlu0 %v531_v4  ;;  %69 = vperm.xlu1 %454, %v33_v3   ;;  %v255_v12 = vld [vmem:[%s704_s6] sm:$0x7]  ;;  %v131_v14 = vld [vmem:[%s702_s4 + $0x18] sm:$0xff]  ;;  %v125_v57 = vld [vmem:[%s701_s3 + $0x8] sm:$0xff]  ;;  %s354_s21 = sshll.u32 %s535_s20, 4  ;;  %s364_s1 = sshll.u32 %s536_s22, 4  ;;  %s355_s21 = int_to_ptr.vmem [resolvable:$true] %s354_s21  ;;  %s365_s1 = int_to_ptr.vmem [resolvable:$true] %s364_s1 }
   0x7   :  { %38 = vperm.xlu0 %457, %v32_v1   ;;  %v124_v15 = vld [vmem:[%s701_s3] sm:$0xff]  ;;  %v58_v22 = vsub.s32 0, %v57_v19  ;;  %v82_v23 = vsub.s32 1, %v57_v19  ;;  %v126_v58 = vld [vmem:[%s701_s3 + $0x10] sm:$0xff]  ;;  %v127_v59 = vld [vmem:[%s701_s3 + $0x18] sm:$0xff]  ;;  %s460_s23 = scalar_lea.vmem %s355_s21, 64  ;;  %p465_p1 = scmp.lt.s32.totalorder %s355_s21, %s355_s21 }
   0x8   :  { %415 = vmatprep.mubr.msk.f32.mxu0 %vm152_vm0, %v124_v15  ;;  %v31_v24 = vld [vmem:[%s698_s0] sm:$0x3]  ;;  %p461_p0 = scmp.ne.s32.totalorder %s355_s21, %s460_s23  ;;  %p466_p2 = scmp.lt.s32.totalorder %s460_s23, %s460_s23 }
   0x9   :  { %v59_v27 = vrot.slane %v31_v24, %v58_v22  ;;  %v83_v28 = vrot.slane %v31_v24, %v82_v23 }
   0xa   :  { %455 = vset.pattern.permute.xlu1 %v531_v4  ;;  %p467_p3 = por %p466_p2, %p465_p1 }
   0xb   :  { %43 = vperm.xlu0 %457, %v33_v3   ;;  %53 = vperm.xlu1 %455, %v35_v5  }
   0xc   :  { %p468_p4 = pnand %p467_p3, %p461_p0 }
   0xf   :  { %48 = vperm.xlu0 %457, %v34_v0   ;;  %458 = vset.pattern.permute.xlu1 %v530_v2 }
  0x10   :  { %77 = vperm.xlu1 %458, %v35_v5  }
  0x13   :  { %103 = vperm.xlu0 %457, %v93_v6  }
  0x14   :  { %459 = vset.pattern.permute.xlu1 %v531_v4 }
  0x15   :  { %98 = vperm.xlu1 %459, %v92_v7  }
  0x17   :  { %134 = vperm.xlu0 %457, %v128_v8  }
  0x19   :  { %108 = vperm.xlu1 %459, %v94_v9  }
  0x1b   :  { %144 = vperm.xlu0 %457, %v130_v10  }
  0x1d   :  { %113 = vperm.xlu1 %459, %v95_v11  }
  0x1f   :  { %258 = vperm.xlu0 %457, %v255_v12  }
  0x21   :  { %139 = vperm.xlu1 %459, %v129_v13  }
  0x25   :  { %149 = vperm.xlu1 %459, %v131_v14  }
  0x81   :  { %v66_v17 = vpop.permute.xlu1 %65  ;;  %v74_v18 = vpop.permute.xlu0 %73 }
  0x82   :  { %v84_v34 = vmul.f32 %v83_v28, %v66_v17  ;;  %v86_v42 = vmul.f32 %v83_v28, %v74_v18  ;;  %v254_v17 = vld [vmem:[%s703_s5] sm:$0x7] }
  0x85   :  { %v70_v20 = vpop.permute.xlu1 %69 }
  0x86   :  { %v39_v21 = vpop.permute.xlu0 %38  ;;  %v85_v31 = vmul.f32 %v83_v28, %v70_v20 }
  0x87   :  { %v60_v32 = vmul.f32 %v59_v27, %v39_v21 }
  0x89   :  { %v88_v38 = vadd.f32 %v84_v34, %v60_v32 }
  0x8a   :  { %v44_v25 = vpop.permute.xlu0 %43  ;;  %v54_v26 = vpop.permute.xlu1 %53 }
  0x8b   :  { %v61_v29 = vmul.f32 %v59_v27, %v44_v25  ;;  %v63_v47 = vmul.f32 %v59_v27, %v54_v26 }
  0x8d   :  { %v89_v35 = vadd.f32 %v85_v31, %v61_v29 }
  0x8e   :  { %v49_v30 = vpop.permute.xlu0 %48 }
  0x8f   :  { %v78_v33 = vpop.permute.xlu1 %77  ;;  %v62_v40 = vmul.f32 %v59_v27, %v49_v30 }
  0x90   :  { %v87_v43 = vmul.f32 %v83_v28, %v78_v33 }
  0x91   :  { %v90_v48 = vadd.f32 %v86_v42, %v62_v40 }
  0x92   :  { %v104_v36 = vpop.permute.xlu0 %103  ;;  %v91_v51 = vadd.f32 %v87_v43, %v63_v47 }
  0x93   :  { %v117_v37 = vadd.f32 %v104_v36, %v89_v35 }
  0x94   :  { %v99_v39 = vpop.permute.xlu1 %98 }
  0x95   :  { %v116_v41 = vadd.f32 %v99_v39, %v88_v38  ;;  %v121_v44 = vmax.f32 %v117_v37, 0.0 }
  0x96   :  { %v135_v63 = vpop.permute.xlu0 %134 }
  0x97   :  { %v120_v45 = vmax.f32 %v116_v41, 0.0 }
  0x98   :  { %v109_v46 = vpop.permute.xlu1 %108 }
  0x99   :  { %v432_v49 = vpack.c.bf16 %v121_v44, %v120_v45  ;;  %v118_v50 = vadd.f32 %v109_v46, %v90_v48 }
  0x9a   :  { %v145_v9 = vpop.permute.xlu0 %144 }
  0x9b   :  { %433 = vmatprep.subr.bf16.mxu0 %v432_v49  ;;  %v122_v54 = vmax.f32 %v118_v50, 0.0 }
  0x9c   :  { %v114_v52 = vpop.permute.xlu1 %113  ;;  %435 = vmatpush3.bf16.msra.mxu0 %v432_v49 }
  0x9d   :  { %v119_v53 = vadd.f32 %v114_v52, %v91_v51 }
  0x9e   :  { %v259_v18 = vpop.permute.xlu0 %258 }
  0x9f   :  { %v123_v55 = vmax.f32 %v119_v53, 0.0 }
  0xa0   :  { %v140_v62 = vpop.permute.xlu1 %139 }
  0xa1   :  { %v436_v56 = vpack.c.bf16 %v123_v55, %v122_v54 }
  0xa3   :  { %437 = vmatprep.subr.bf16.mxu0 %v436_v56 }
  0xa4   :  { %439 = vmatpush3.bf16.msra.mxu0 %v436_v56  ;;  %v150_v6 = vpop.permute.xlu1 %149 }
  0xa7   :  { %416 = vmatmul.mubr.msk.f32.vlgmr.msra.gmra.mrb[0].mxu0 %vm152_vm0, %v125_v57 }
  0xa8   :  { %418 = vmatprep.mubr.msk.f32.mxu0 %vm152_vm0, %v126_v58 }
  0xab   :  { %419 = vmatmul.mubr.msk.f32.gmra.mrb[2].mxu0 %vm152_vm0, %v127_v59 }
 0x17a   :  { %v417_v0 = vpop.f32.mrb[0].mxu0 }
 0x17b   :  { %v237_v1 = vadd.f32 %v417_v0, %v140_v62  ;;  %v231_v3 = vpop.f32.mrb[1].mxu0 }
 0x17c   :  { %v232_v4 = vadd.f32 %v231_v3, %v135_v63 }
 0x17d   :  { %v251_v5 = vmax.f32 %v237_v1, 0.0 }
 0x17e   :  { %v250_v7 = vmax.f32 %v232_v4, 0.0  ;;  %v420_v8 = vpop.f32.mrb[2].mxu0 }
 0x17f   :  { %v247_v10 = vadd.f32 %v420_v8, %v150_v6  ;;  %v241_v11 = vpop.f32.mrb[3].mxu0 }
 0x180   :  { %v242_v12 = vadd.f32 %v241_v11, %v145_v9  ;;  %v441_v13 = vpack.c.bf16 %v251_v5, %v250_v7 }
 0x181   :  { %v253_v14 = vmax.f32 %v247_v10, 0.0 }
 0x182   :  { %v252_v15 = vmax.f32 %v242_v12, 0.0  ;;  %442 = vmatpush3.bf16.msra.mxu1 %v441_v13 }
 0x183   :  { %443 = vmatprep.subr.bf16.mxu1 %v532_v60 }
 0x184   :  { %v444_v16 = vpack.c.bf16 %v253_v14, %v252_v15 }
 0x186   :  { %445 = vmatpush3.bf16.msra.mxu1 %v444_v16 }
 0x189   :  { %430 = vmatmul.mubr.msk.f32.vlgmr.msra.gmra.mrb[0].mxu1 %vm152_vm0, %v254_v17 }
 0x25c   :  { %v330_v19 = vpop.f32.mrb[0].mxu1 }
 0x25d   :  { %v331_v20 = vadd.f32 %v330_v19, %v259_v18  ;;  %v431_v21 = vpop.f32.mrb[1].mxu1 }
 0x25f   :  { %334 = vst [vmem:[#allocation2] sm:$0x7] %v331_v20  ;;  %v336_v22 = vrot.slane %v331_v20, 1 }
 0x260   :  { %471 = shalt.err (!%p468_p4)
}
 0x261   :  { %s472_s25 = scalar_lea.hbm %s705_s7, 64 }
 0x262   :  { %p473_p5 = scmp.ne.s32.totalorder %s705_s7, %s472_s25  ;;  %p476_p6 = scmp.lt.u32.totalorder %s472_s25, %s705_s7 }
 0x264   :  { %p478_p7 = pnand %p476_p6, %p473_p5 }
 0x266   :  { %481 = shalt.err (!%p478_p7)
}
 0x267   :  { %357 = dma.vmem_to_hbm [thread:$0]  %s355_s21, 64, %s705_s7, [#allocation3]   ;;  %vm338_vm2 = vcmp.ge.f32.partialorder %v331_v20, %v336_v22  ;;  %v340_v23 = vmax.f32 %v331_v20, %v336_v22  ;;  %v341_v24 = vrot.slane %v331_v20, 2 }
 0x268   :  { %s537_s11 = smov [#allocation6]   ;;  %v339_v25 = vsel %vm338_vm2, 0, %v530_v2  ;;  %s482_s13 = scalar_lea.vmem %s365_s1, 16 }
 0x269   :  { %s374_s12 = sshll.u32 %s537_s11, 4  ;;  %vm343_vm3 = vcmp.ge.f32.partialorder %v340_v23, %v341_v24  ;;  %v346_v26 = vmax.f32 %v340_v23, %v341_v24  ;;  %p483_p8 = scmp.ne.s32.totalorder %s365_s1, %s482_s13  ;;  %s666_s12 = int_to_ptr.vmem [resolvable:$true] %s374_s12 }
 0x26a   :  { %v344_v27 = vsel %vm343_vm3, %v339_v25, 2  ;;  %s486_s14 = scalar_lea.vmem %s365_s1, 32  ;;  %p487_p9 = scmp.lt.s32.totalorder %s365_s1, %s365_s1 }
 0x26b   :  { %345 = vst [vmem:[#allocation4] sm:$0x1] %v344_v27  ;;  %347 = vst [vmem:[#allocation6] sm:$0x1] %v346_v26  ;;  %p488_p10 = scmp.lt.s32.totalorder %s486_s14, %s482_s13 }
 0x26d   :  { %p489_p11 = por %p488_p10, %p487_p9 }
 0x26f   :  { %p490_p12 = pnand %p489_p11, %p483_p8 }
 0x271   :  { %493 = shalt.err (!%p490_p12)
}
 0x272   :  { %s494_s6 = scalar_lea.hbm %s706_s8, 16 }
 0x273   :  { %p495_p13 = scmp.ne.s32.totalorder %s706_s8, %s494_s6  ;;  %p498_p0 = scmp.lt.u32.totalorder %s494_s6, %s706_s8 }
 0x275   :  { %p500_p1 = pnand %p498_p0, %p495_p13 }
 0x277   :  { %503 = shalt.err (!%p500_p1)
}
 0x278   :  { %367 = dma.vmem_to_hbm [thread:$0]  %s365_s1, 16, %s706_s8, [#allocation5]  }
 0x279   :  { %s504_s3 = scalar_lea.vmem %s666_s12, 16  ;;  %s508_s19 = scalar_lea.vmem %s666_s12, 32 }
 0x27a   :  { %p505_p2 = scmp.ne.s32.totalorder %s666_s12, %s504_s3  ;;  %p509_p3 = scmp.lt.s32.totalorder %s666_s12, %s666_s12 }
 0x27b   :  { %p510_p4 = scmp.lt.s32.totalorder %s508_s19, %s504_s3 }
 0x27d   :  { %p511_p5 = por %p510_p4, %p509_p3 }
 0x27f   :  { %p512_p6 = pnand %p511_p5, %p505_p2 }
 0x281   :  { %515 = shalt.err (!%p512_p6)
}
 0x282   :  { %s516_s22 = scalar_lea.hbm %s707_s9, 16 }
 0x283   :  { %p517_p7 = scmp.ne.s32.totalorder %s707_s9, %s516_s22  ;;  %p520_p8 = scmp.lt.u32.totalorder %s516_s22, %s707_s9 }
 0x285   :  { %p522_p9 = pnand %p520_p8, %p517_p7 }
 0x287   :  { %525 = shalt.err (!%p522_p9)
}
 0x288   :  { %377 = dma.vmem_to_hbm [thread:$0]  %s666_s12, 16, %s707_s9, [#allocation5]  }
 0x289   :  { %526 = dma.done.wait [#allocation3], 64  }
 0x28a   :  { %527 = vsyncadd [#allocation3], 4294967232 }
 0x28b   :  { %528 = dma.done.wait [#allocation5], 32  }
 0x28c   :  { %529 = vsyncadd [#allocation5], 4294967264 }
 0x28d   :  { %387 = vsyncpa [#allocation3], 1 }
 0x28e   :  { %388 = vsyncpa [#allocation5], 1 }

</bundles_post_ra>
